<compile_context>
chip_gen: v7x
topology: tpu7x:2x2x1
jax: 0.10.0
libtpu: 0.0.40
codegen_flags: <defaults>
</compile_context>

<pallas_src>
import functools

import jax
import jax.numpy as jnp
from jax.experimental import pallas as pl
from jax.experimental.pallas import tpu as pltpu


# ---------------------------------------------------------------------------
# Fused Pallas kernel: embedding gather + pos add + all layers + all heads + all batches.
# ---------------------------------------------------------------------------
def _fused_forward_kernel(ids_ref, emb_ref, pos_ref, mask_ref, wqkv_ref, wo_ref, bo_ref,
                          o_ref, *, num_layers, heads, seq_len, batch):
    N, E = o_ref.shape                                   # N = B * S
    D = E // heads
    vocab = emb_ref.shape[0]

    # ---- fused token-embedding gather + positional add (one-hot MXU gather) ----
    ids = ids_ref[...]                                                    # (N, 1) int32
    vocab_iota = jax.lax.broadcasted_iota(jnp.int32, (N, vocab), 1)
    onehot = (vocab_iota == ids).astype(jnp.float32)                      # (N, vocab)
    x = jnp.dot(onehot, emb_ref[...], preferred_element_type=jnp.float32)  # (N, E)
    x = x + jnp.concatenate([pos_ref[...]] * batch, axis=0)               # tile (S,E) -> (N,E)

    mask = mask_ref[...]                                                  # (H*N, H*N): 0 / -1e30

    for l in range(num_layers):                          # static unroll (num_layers small)
        # Stack heads along sublanes: x_s[h*N + n, :] = x[n, h*D:(h+1)*D].
        x_s = jnp.concatenate([x[:, h * D:(h + 1) * D] for h in range(heads)], axis=0)  # (H*N, D)

        # Single packed QKV matmul (softmax scale already folded into the Q block).
        qkv = jnp.dot(x_s, wqkv_ref[l], preferred_element_type=jnp.float32)             # (H*N, 3D)
        q = qkv[:, 0:D]
        k = qkv[:, D:2 * D]
        v = qkv[:, 2 * D:3 * D]

        # One scores matmul, one softmax, one ctx matmul for ALL heads and batches.
        e = jax.lax.dot_general(q, k, (((1,), (1,)), ((), ())),
                                preferred_element_type=jnp.float32)                     # (H*N, H*N)
        e = e + mask
        m = jnp.max(e, axis=-1, keepdims=True)
        p = jnp.exp(e - m)
        denom = jnp.sum(p, axis=-1, keepdims=True)
        attn = p * pl.reciprocal(denom, approx=False)     # exact: removes the flagged concern
        ctx = jnp.dot(attn, v, preferred_element_type=jnp.float32)                      # (H*N, D)

        # fc_out head merge: accumulate ctx_h @ Wo[h]; initialise from head 0 (no zero fill).
        out = jnp.dot(ctx[0:N, :], wo_ref[l, 0], preferred_element_type=jnp.float32)
        for h in range(1, heads):
            out = out + jnp.dot(ctx[h * N:(h + 1) * N, :], wo_ref[l, h],
                                preferred_element_type=jnp.float32)
        x = out + bo_ref[l]                                                             # (N, E)

    # TODO(synk): at larger B*S*E present the output lane-dense (last dim multiple of 128);
    # not worth the relayout for a 2 KB result.
    o_ref[...] = x.astype(o_ref.dtype)


def fused_transformer_forward(ids_flat, emb, pos, mask, wqkv, wo, bo, *, heads, seq_len, batch):
    N = batch * seq_len
    E = emb.shape[1]
    kernel = functools.partial(_fused_forward_kernel, num_layers=wqkv.shape[0],
                               heads=heads, seq_len=seq_len, batch=batch)
    vmem = pl.BlockSpec(memory_space=pltpu.MemorySpace.VMEM)
    # No grid, no auto-pipeline: all operands (<50 KB) land in VMEM once and the kernel runs once.
    return pl.pallas_call(
        kernel,
        out_shape=jax.ShapeDtypeStruct((N, E), jnp.float32),
        in_specs=[vmem] * 7,
        out_specs=vmem,
    )(ids_flat, emb, pos, mask, wqkv, wo, bo)


# ---------------------------------------------------------------------------
# Parameters (same structure / semantics as before).
# ---------------------------------------------------------------------------
def init_params(key, vocab_size, embed_size, num_layers, heads, max_seq_len):
    D = embed_size // heads
    keys = jax.random.split(key, 2 + 5 * num_layers)
    params = {
        "embedding": jax.random.normal(keys[0], (vocab_size, embed_size), jnp.float32) * 0.02,
        "pos_embedding": jax.random.normal(keys[1], (max_seq_len, embed_size), jnp.float32) * 0.02,
        "layers": [],
    }
    k = 2
    for _ in range(num_layers):
        params["layers"].append({
            "wq": jax.random.normal(keys[k + 0], (D, D), jnp.float32) * 0.1,
            "wk": jax.random.normal(keys[k + 1], (D, D), jnp.float32) * 0.1,
            "wv": jax.random.normal(keys[k + 2], (D, D), jnp.float32) * 0.1,
            "wo": jax.random.normal(keys[k + 3], (embed_size, embed_size), jnp.float32) * 0.1,
            "bo": jax.random.normal(keys[k + 4], (1, embed_size), jnp.float32) * 0.1,
        })
        k += 5
    return params


def pack_params(params, *, heads, batch, seq_len):
    """One-time packing for the fused kernel (hoisted out of the per-forward path)."""
    E = params["embedding"].shape[1]
    D = E // heads
    scale = 1.0 / (float(E) ** 0.5)                       # PyTorch: energy / sqrt(embed_size)

    # Packed per-layer QKV weight: (D, 3D) = [wq*scale | wk | wv].
    wqkv = jnp.stack([jnp.concatenate([l["wq"] * scale, l["wk"], l["wv"]], axis=1)
                      for l in params["layers"]])                          # (L, D, 3D)
    wo = jnp.stack([l["wo"].reshape(heads, D, E) for l in params["layers"]])  # (L, H, D, E)
    bo = jnp.stack([l["bo"] for l in params["layers"]])                    # (L, 1, E)

    # Additive mask on the head/batch-stacked (H*B*S, H*B*S) score matrix:
    # rows r, r' may attend iff they share the same (head, batch) block <=> r//S == r'//S.
    n_rows = heads * batch * seq_len
    grp = jnp.arange(n_rows, dtype=jnp.int32) // seq_len
    mask = jnp.where(grp[:, None] == grp[None, :], 0.0, -1e30).astype(jnp.float32)

    pos = params["pos_embedding"][:seq_len]                                # (S, E) static slice
    return {"emb": params["embedding"], "pos": pos, "mask": mask,
            "wqkv": wqkv, "wo": wo, "bo": bo,
            "heads": heads, "batch": batch, "seq_len": seq_len}


def embedding_attention_transformer(token_ids, packed, *, max_seq_len, vocab_size):
    B, S = token_ids.shape
    heads, batch, seq_len = packed["heads"], packed["batch"], packed["seq_len"]
    assert (B, S) == (batch, seq_len), "packed params were built for a different (batch, seq)"
    assert S <= max_seq_len, "Position values exceed max_seq_len"
    assert int(token_ids.max()) < vocab_size, "Token IDs exceed vocabulary size"
    E = packed["emb"].shape[1]

    ids_flat = token_ids.reshape(B * S, 1).astype(jnp.int32)
    out_flat = fused_transformer_forward(ids_flat, packed["emb"], packed["pos"],
                                         packed["mask"], packed["wqkv"], packed["wo"],
                                         packed["bo"], heads=heads, seq_len=S, batch=B)
    return out_flat.reshape(B, S, E)


# ---------------------------------------------------------------------------
# Pure-JAX reference (same math) for a sanity check.
# ---------------------------------------------------------------------------
def _reference_forward(token_ids, params, *, heads):
    E = params["embedding"].shape[1]
    D = E // heads
    B, S = token_ids.shape
    pos = params["pos_embedding"][jnp.arange(S, dtype=jnp.int32)]
    x = params["embedding"][token_ids] + pos[None]
    scale = 1.0 / (float(E) ** 0.5)
    for layer in params["layers"]:
        outs = []
        for h in range(heads):
            xh = x[:, :, h * D:(h + 1) * D]
            q = xh @ layer["wq"]
            k = xh @ layer["wk"]
            v = xh @ layer["wv"]
            e = jnp.einsum("bqd,bkd->bqk", q, k) * scale
            a = jax.nn.softmax(e, axis=-1)
            outs.append(jnp.einsum("bqk,bkd->bqd", a, v))
        x = jnp.concatenate(outs, axis=-1) @ layer["wo"] + layer["bo"][0]
    return x


if __name__ == "__main__":
    vocab_size, embed_size, num_layers, heads, max_seq_len = 50, 32, 2, 4, 16
    batch, seq = 2, 8

    key = jax.random.PRNGKey(0)
    k_tok, k_par = jax.random.split(key)
    token_ids = jax.random.randint(k_tok, (batch, seq), 3, vocab_size, dtype=jnp.int32)
    params = init_params(k_par, vocab_size, embed_size, num_layers, heads, max_seq_len)

    # One-time packing, hoisted out of the per-forward path (perf-review item 4).
    packed = pack_params(params, heads=heads, batch=batch, seq_len=seq)

    out = embedding_attention_transformer(token_ids, packed,
                                          max_seq_len=max_seq_len, vocab_size=vocab_size)
    out = jax.block_until_ready(out)
    assert out.shape == (batch, seq, embed_size), out.shape

    ref = _reference_forward(token_ids, params, heads=heads)
    max_err = float(jnp.max(jnp.abs(out - ref)))
    assert jnp.allclose(out, ref, atol=1e-2, rtol=1e-1), max_err

    print("KERNEL_OK")
</pallas_src>

<mosaic_0001>
module attributes {stable_mosaic.version = 11 : i64} {
  func.func @_fused_forward_kernel(%arg0: memref<16x1xi32, #tpu.memory_space<vmem>>, %arg1: memref<50x32xf32, #tpu.memory_space<vmem>>, %arg2: memref<8x32xf32, #tpu.memory_space<vmem>>, %arg3: memref<64x64xf32, #tpu.memory_space<vmem>>, %arg4: memref<2x8x24xf32, #tpu.memory_space<vmem>>, %arg5: memref<2x4x8x32xf32, #tpu.memory_space<vmem>>, %arg6: memref<2x1x32xf32, #tpu.memory_space<vmem>>, %arg7: memref<16x32xf32, #tpu.memory_space<vmem>>) attributes {dimension_semantics = [], scalar_prefetch = 0 : i64, scratch_operands = 0 : i64, tpu.core_type = #tpu.core_type<tc>} {
    %c0 = arith.constant 0 : index
    %c0_0 = arith.constant 0 : index
    %0 = vector.load %arg0[%c0, %c0_0] : memref<16x1xi32, #tpu.memory_space<vmem>>, vector<16x1xi32>
    %1 = tpu.iota {dimensions = array<i32: 1>} : vector<16x50xi32>
    %2 = vector.broadcast %0 : vector<16x1xi32> to vector<16x50xi32>
    %3 = arith.cmpi eq, %1, %2 : vector<16x50xi32>
    %4 = arith.extui %3 : vector<16x50xi1> to vector<16x50xi32>
    %5 = arith.sitofp %4 : vector<16x50xi32> to vector<16x50xf32>
    %c0_1 = arith.constant 0 : index
    %c0_2 = arith.constant 0 : index
    %6 = vector.load %arg1[%c0_1, %c0_2] : memref<50x32xf32, #tpu.memory_space<vmem>>, vector<50x32xf32>
    %cst = arith.constant dense<0.000000e+00> : vector<16x32xf32>
    %7 = tpu.matmul %5, %6, %cst {dimension_numbers = #tpu.dot_dimension_numbers<[1], [0], [0], [1], [0, 0, 1, 1], [], []>} : vector<16x50xf32>, vector<50x32xf32>, vector<16x32xf32> -> vector<16x32xf32>
    %c0_3 = arith.constant 0 : index
    %c0_4 = arith.constant 0 : index
    %8 = vector.load %arg2[%c0_3, %c0_4] : memref<8x32xf32, #tpu.memory_space<vmem>>, vector<8x32xf32>
    %9 = tpu.concatenate %8, %8 in 0 : vector<8x32xf32>, vector<8x32xf32> -> vector<16x32xf32>
    %10 = arith.addf %7, %9 : vector<16x32xf32>
    %c0_5 = arith.constant 0 : index
    %c0_6 = arith.constant 0 : index
    %11 = vector.load %arg3[%c0_5, %c0_6] : memref<64x64xf32, #tpu.memory_space<vmem>>, vector<64x64xf32>
    %12 = vector.extract_strided_slice %10 {offsets = [0, 0], sizes = [16, 8], strides = [1, 1]} : vector<16x32xf32> to vector<16x8xf32>
    %13 = vector.extract_strided_slice %10 {offsets = [0, 8], sizes = [16, 8], strides = [1, 1]} : vector<16x32xf32> to vector<16x8xf32>
    %14 = vector.extract_strided_slice %10 {offsets = [0, 16], sizes = [16, 8], strides = [1, 1]} : vector<16x32xf32> to vector<16x8xf32>
    %15 = vector.extract_strided_slice %10 {offsets = [0, 24], sizes = [16, 8], strides = [1, 1]} : vector<16x32xf32> to vector<16x8xf32>
    %16 = tpu.concatenate %12, %13, %14, %15 in 0 : vector<16x8xf32>, vector<16x8xf32>, vector<16x8xf32>, vector<16x8xf32> -> vector<64x8xf32>
    %c0_7 = arith.constant 0 : index
    %c0_8 = arith.constant 0 : index
    %c0_9 = arith.constant 0 : index
    %17 = vector.load %arg4[%c0_7, %c0_8, %c0_9] : memref<2x8x24xf32, #tpu.memory_space<vmem>>, vector<1x8x24xf32>
    %18 = vector.shape_cast %17 : vector<1x8x24xf32> to vector<8x24xf32>
    %cst_10 = arith.constant dense<0.000000e+00> : vector<64x24xf32>
    %19 = tpu.matmul %16, %18, %cst_10 {dimension_numbers = #tpu.dot_dimension_numbers<[1], [0], [0], [1], [0, 0, 1, 1], [], []>} : vector<64x8xf32>, vector<8x24xf32>, vector<64x24xf32> -> vector<64x24xf32>
    %20 = vector.extract_strided_slice %19 {offsets = [0, 0], sizes = [64, 8], strides = [1, 1]} : vector<64x24xf32> to vector<64x8xf32>
    %21 = vector.extract_strided_slice %19 {offsets = [0, 8], sizes = [64, 8], strides = [1, 1]} : vector<64x24xf32> to vector<64x8xf32>
    %22 = vector.extract_strided_slice %19 {offsets = [0, 16], sizes = [64, 8], strides = [1, 1]} : vector<64x24xf32> to vector<64x8xf32>
    %cst_11 = arith.constant dense<0.000000e+00> : vector<64x64xf32>
    %23 = tpu.matmul %20, %21, %cst_11 {dimension_numbers = #tpu.dot_dimension_numbers<[1], [1], [0], [0], [0, 0, 1, 0], [], []>} : vector<64x8xf32>, vector<64x8xf32>, vector<64x64xf32> -> vector<64x64xf32>
    %24 = arith.addf %23, %11 : vector<64x64xf32>
    %cst_12 = arith.constant dense<0xFF800000> : vector<64xf32>
    %25 = vector.multi_reduction <maximumf>, %24, %cst_12 [1] : vector<64x64xf32> to vector<64xf32>
    %26 = vector.shape_cast %25 : vector<64xf32> to vector<64x1xf32>
    %27 = vector.broadcast %26 : vector<64x1xf32> to vector<64x64xf32>
    %28 = arith.subf %24, %27 : vector<64x64xf32>
    %29 = math.exp %28 : vector<64x64xf32>
    %cst_13 = arith.constant dense<0.000000e+00> : vector<64xf32>
    %30 = vector.multi_reduction <add>, %29, %cst_13 [1] : vector<64x64xf32> to vector<64xf32>
    %31 = vector.shape_cast %30 : vector<64xf32> to vector<64x1xf32>
    %32 = tpu.reciprocal %31 : vector<64x1xf32> -> vector<64x1xf32>
    %33 = vector.broadcast %32 : vector<64x1xf32> to vector<64x64xf32>
    %34 = arith.mulf %29, %33 : vector<64x64xf32>
    %cst_14 = arith.constant dense<0.000000e+00> : vector<64x8xf32>
    %35 = tpu.matmul %34, %22, %cst_14 {dimension_numbers = #tpu.dot_dimension_numbers<[1], [0], [0], [1], [0, 0, 1, 1], [], []>} : vector<64x64xf32>, vector<64x8xf32>, vector<64x8xf32> -> vector<64x8xf32>
    %36 = vector.extract_strided_slice %35 {offsets = [0, 0], sizes = [16, 8], strides = [1, 1]} : vector<64x8xf32> to vector<16x8xf32>
    %c0_15 = arith.constant 0 : index
    %c0_16 = arith.constant 0 : index
    %c0_17 = arith.constant 0 : index
    %c0_18 = arith.constant 0 : index
    %37 = vector.load %arg5[%c0_15, %c0_16, %c0_17, %c0_18] : memref<2x4x8x32xf32, #tpu.memory_space<vmem>>, vector<1x1x8x32xf32>
    %38 = vector.shape_cast %37 : vector<1x1x8x32xf32> to vector<8x32xf32>
    %cst_19 = arith.constant dense<0.000000e+00> : vector<16x32xf32>
    %39 = tpu.matmul %36, %38, %cst_19 {dimension_numbers = #tpu.dot_dimension_numbers<[1], [0], [0], [1], [0, 0, 1, 1], [], []>} : vector<16x8xf32>, vector<8x32xf32>, vector<16x32xf32> -> vector<16x32xf32>
    %40 = vector.extract_strided_slice %35 {offsets = [16, 0], sizes = [16, 8], strides = [1, 1]} : vector<64x8xf32> to vector<16x8xf32>
    %c0_20 = arith.constant 0 : index
    %c1 = arith.constant 1 : index
    %c0_21 = arith.constant 0 : index
    %c0_22 = arith.constant 0 : index
    %41 = vector.load %arg5[%c0_20, %c1, %c0_21, %c0_22] : memref<2x4x8x32xf32, #tpu.memory_space<vmem>>, vector<1x1x8x32xf32>
    %42 = vector.shape_cast %41 : vector<1x1x8x32xf32> to vector<8x32xf32>
    %cst_23 = arith.constant dense<0.000000e+00> : vector<16x32xf32>
    %43 = tpu.matmul %40, %42, %cst_23 {dimension_numbers = #tpu.dot_dimension_numbers<[1], [0], [0], [1], [0, 0, 1, 1], [], []>} : vector<16x8xf32>, vector<8x32xf32>, vector<16x32xf32> -> vector<16x32xf32>
    %44 = arith.addf %39, %43 : vector<16x32xf32>
    %45 = vector.extract_strided_slice %35 {offsets = [32, 0], sizes = [16, 8], strides = [1, 1]} : vector<64x8xf32> to vector<16x8xf32>
    %c0_24 = arith.constant 0 : index
    %c2 = arith.constant 2 : index
    %c0_25 = arith.constant 0 : index
    %c0_26 = arith.constant 0 : index
    %46 = vector.load %arg5[%c0_24, %c2, %c0_25, %c0_26] : memref<2x4x8x32xf32, #tpu.memory_space<vmem>>, vector<1x1x8x32xf32>
    %47 = vector.shape_cast %46 : vector<1x1x8x32xf32> to vector<8x32xf32>
    %cst_27 = arith.constant dense<0.000000e+00> : vector<16x32xf32>
    %48 = tpu.matmul %45, %47, %cst_27 {dimension_numbers = #tpu.dot_dimension_numbers<[1], [0], [0], [1], [0, 0, 1, 1], [], []>} : vector<16x8xf32>, vector<8x32xf32>, vector<16x32xf32> -> vector<16x32xf32>
    %49 = arith.addf %44, %48 : vector<16x32xf32>
    %50 = vector.extract_strided_slice %35 {offsets = [48, 0], sizes = [16, 8], strides = [1, 1]} : vector<64x8xf32> to vector<16x8xf32>
    %c0_28 = arith.constant 0 : index
    %c3 = arith.constant 3 : index
    %c0_29 = arith.constant 0 : index
    %c0_30 = arith.constant 0 : index
    %51 = vector.load %arg5[%c0_28, %c3, %c0_29, %c0_30] : memref<2x4x8x32xf32, #tpu.memory_space<vmem>>, vector<1x1x8x32xf32>
    %52 = vector.shape_cast %51 : vector<1x1x8x32xf32> to vector<8x32xf32>
    %cst_31 = arith.constant dense<0.000000e+00> : vector<16x32xf32>
    %53 = tpu.matmul %50, %52, %cst_31 {dimension_numbers = #tpu.dot_dimension_numbers<[1], [0], [0], [1], [0, 0, 1, 1], [], []>} : vector<16x8xf32>, vector<8x32xf32>, vector<16x32xf32> -> vector<16x32xf32>
    %54 = arith.addf %49, %53 : vector<16x32xf32>
    %c0_32 = arith.constant 0 : index
    %c0_33 = arith.constant 0 : index
    %c0_34 = arith.constant 0 : index
    %55 = vector.load %arg6[%c0_32, %c0_33, %c0_34] : memref<2x1x32xf32, #tpu.memory_space<vmem>>, vector<1x1x32xf32>
    %56 = vector.shape_cast %55 : vector<1x1x32xf32> to vector<1x32xf32>
    %57 = vector.broadcast %56 : vector<1x32xf32> to vector<16x32xf32>
    %58 = arith.addf %54, %57 : vector<16x32xf32>
    %59 = vector.extract_strided_slice %58 {offsets = [0, 0], sizes = [16, 8], strides = [1, 1]} : vector<16x32xf32> to vector<16x8xf32>
    %60 = vector.extract_strided_slice %58 {offsets = [0, 8], sizes = [16, 8], strides = [1, 1]} : vector<16x32xf32> to vector<16x8xf32>
    %61 = vector.extract_strided_slice %58 {offsets = [0, 16], sizes = [16, 8], strides = [1, 1]} : vector<16x32xf32> to vector<16x8xf32>
    %62 = vector.extract_strided_slice %58 {offsets = [0, 24], sizes = [16, 8], strides = [1, 1]} : vector<16x32xf32> to vector<16x8xf32>
    %63 = tpu.concatenate %59, %60, %61, %62 in 0 : vector<16x8xf32>, vector<16x8xf32>, vector<16x8xf32>, vector<16x8xf32> -> vector<64x8xf32>
    %c1_35 = arith.constant 1 : index
    %c0_36 = arith.constant 0 : index
    %c0_37 = arith.constant 0 : index
    %64 = vector.load %arg4[%c1_35, %c0_36, %c0_37] : memref<2x8x24xf32, #tpu.memory_space<vmem>>, vector<1x8x24xf32>
    %65 = vector.shape_cast %64 : vector<1x8x24xf32> to vector<8x24xf32>
    %cst_38 = arith.constant dense<0.000000e+00> : vector<64x24xf32>
    %66 = tpu.matmul %63, %65, %cst_38 {dimension_numbers = #tpu.dot_dimension_numbers<[1], [0], [0], [1], [0, 0, 1, 1], [], []>} : vector<64x8xf32>, vector<8x24xf32>, vector<64x24xf32> -> vector<64x24xf32>
    %67 = vector.extract_strided_slice %66 {offsets = [0, 0], sizes = [64, 8], strides = [1, 1]} : vector<64x24xf32> to vector<64x8xf32>
    %68 = vector.extract_strided_slice %66 {offsets = [0, 8], sizes = [64, 8], strides = [1, 1]} : vector<64x24xf32> to vector<64x8xf32>
    %69 = vector.extract_strided_slice %66 {offsets = [0, 16], sizes = [64, 8], strides = [1, 1]} : vector<64x24xf32> to vector<64x8xf32>
    %cst_39 = arith.constant dense<0.000000e+00> : vector<64x64xf32>
    %70 = tpu.matmul %67, %68, %cst_39 {dimension_numbers = #tpu.dot_dimension_numbers<[1], [1], [0], [0], [0, 0, 1, 0], [], []>} : vector<64x8xf32>, vector<64x8xf32>, vector<64x64xf32> -> vector<64x64xf32>
    %71 = arith.addf %70, %11 : vector<64x64xf32>
    %cst_40 = arith.constant dense<0xFF800000> : vector<64xf32>
    %72 = vector.multi_reduction <maximumf>, %71, %cst_40 [1] : vector<64x64xf32> to vector<64xf32>
    %73 = vector.shape_cast %72 : vector<64xf32> to vector<64x1xf32>
    %74 = vector.broadcast %73 : vector<64x1xf32> to vector<64x64xf32>
    %75 = arith.subf %71, %74 : vector<64x64xf32>
    %76 = math.exp %75 : vector<64x64xf32>
    %cst_41 = arith.constant dense<0.000000e+00> : vector<64xf32>
    %77 = vector.multi_reduction <add>, %76, %cst_41 [1] : vector<64x64xf32> to vector<64xf32>
    %78 = vector.shape_cast %77 : vector<64xf32> to vector<64x1xf32>
    %79 = tpu.reciprocal %78 : vector<64x1xf32> -> vector<64x1xf32>
    %80 = vector.broadcast %79 : vector<64x1xf32> to vector<64x64xf32>
    %81 = arith.mulf %76, %80 : vector<64x64xf32>
    %cst_42 = arith.constant dense<0.000000e+00> : vector<64x8xf32>
    %82 = tpu.matmul %81, %69, %cst_42 {dimension_numbers = #tpu.dot_dimension_numbers<[1], [0], [0], [1], [0, 0, 1, 1], [], []>} : vector<64x64xf32>, vector<64x8xf32>, vector<64x8xf32> -> vector<64x8xf32>
    %83 = vector.extract_strided_slice %82 {offsets = [0, 0], sizes = [16, 8], strides = [1, 1]} : vector<64x8xf32> to vector<16x8xf32>
    %c1_43 = arith.constant 1 : index
    %c0_44 = arith.constant 0 : index
    %c0_45 = arith.constant 0 : index
    %c0_46 = arith.constant 0 : index
    %84 = vector.load %arg5[%c1_43, %c0_44, %c0_45, %c0_46] : memref<2x4x8x32xf32, #tpu.memory_space<vmem>>, vector<1x1x8x32xf32>
    %85 = vector.shape_cast %84 : vector<1x1x8x32xf32> to vector<8x32xf32>
    %cst_47 = arith.constant dense<0.000000e+00> : vector<16x32xf32>
    %86 = tpu.matmul %83, %85, %cst_47 {dimension_numbers = #tpu.dot_dimension_numbers<[1], [0], [0], [1], [0, 0, 1, 1], [], []>} : vector<16x8xf32>, vector<8x32xf32>, vector<16x32xf32> -> vector<16x32xf32>
    %87 = vector.extract_strided_slice %82 {offsets = [16, 0], sizes = [16, 8], strides = [1, 1]} : vector<64x8xf32> to vector<16x8xf32>
    %c1_48 = arith.constant 1 : index
    %c1_49 = arith.constant 1 : index
    %c0_50 = arith.constant 0 : index
    %c0_51 = arith.constant 0 : index
    %88 = vector.load %arg5[%c1_48, %c1_49, %c0_50, %c0_51] : memref<2x4x8x32xf32, #tpu.memory_space<vmem>>, vector<1x1x8x32xf32>
    %89 = vector.shape_cast %88 : vector<1x1x8x32xf32> to vector<8x32xf32>
    %cst_52 = arith.constant dense<0.000000e+00> : vector<16x32xf32>
    %90 = tpu.matmul %87, %89, %cst_52 {dimension_numbers = #tpu.dot_dimension_numbers<[1], [0], [0], [1], [0, 0, 1, 1], [], []>} : vector<16x8xf32>, vector<8x32xf32>, vector<16x32xf32> -> vector<16x32xf32>
    %91 = arith.addf %86, %90 : vector<16x32xf32>
    %92 = vector.extract_strided_slice %82 {offsets = [32, 0], sizes = [16, 8], strides = [1, 1]} : vector<64x8xf32> to vector<16x8xf32>
    %c1_53 = arith.constant 1 : index
    %c2_54 = arith.constant 2 : index
    %c0_55 = arith.constant 0 : index
    %c0_56 = arith.constant 0 : index
    %93 = vector.load %arg5[%c1_53, %c2_54, %c0_55, %c0_56] : memref<2x4x8x32xf32, #tpu.memory_space<vmem>>, vector<1x1x8x32xf32>
    %94 = vector.shape_cast %93 : vector<1x1x8x32xf32> to vector<8x32xf32>
    %cst_57 = arith.constant dense<0.000000e+00> : vector<16x32xf32>
    %95 = tpu.matmul %92, %94, %cst_57 {dimension_numbers = #tpu.dot_dimension_numbers<[1], [0], [0], [1], [0, 0, 1, 1], [], []>} : vector<16x8xf32>, vector<8x32xf32>, vector<16x32xf32> -> vector<16x32xf32>
    %96 = arith.addf %91, %95 : vector<16x32xf32>
    %97 = vector.extract_strided_slice %82 {offsets = [48, 0], sizes = [16, 8], strides = [1, 1]} : vector<64x8xf32> to vector<16x8xf32>
    %c1_58 = arith.constant 1 : index
    %c3_59 = arith.constant 3 : index
    %c0_60 = arith.constant 0 : index
    %c0_61 = arith.constant 0 : index
    %98 = vector.load %arg5[%c1_58, %c3_59, %c0_60, %c0_61] : memref<2x4x8x32xf32, #tpu.memory_space<vmem>>, vector<1x1x8x32xf32>
    %99 = vector.shape_cast %98 : vector<1x1x8x32xf32> to vector<8x32xf32>
    %cst_62 = arith.constant dense<0.000000e+00> : vector<16x32xf32>
    %100 = tpu.matmul %97, %99, %cst_62 {dimension_numbers = #tpu.dot_dimension_numbers<[1], [0], [0], [1], [0, 0, 1, 1], [], []>} : vector<16x8xf32>, vector<8x32xf32>, vector<16x32xf32> -> vector<16x32xf32>
    %101 = arith.addf %96, %100 : vector<16x32xf32>
    %c1_63 = arith.constant 1 : index
    %c0_64 = arith.constant 0 : index
    %c0_65 = arith.constant 0 : index
    %102 = vector.load %arg6[%c1_63, %c0_64, %c0_65] : memref<2x1x32xf32, #tpu.memory_space<vmem>>, vector<1x1x32xf32>
    %103 = vector.shape_cast %102 : vector<1x1x32xf32> to vector<1x32xf32>
    %104 = vector.broadcast %103 : vector<1x32xf32> to vector<16x32xf32>
    %105 = arith.addf %101, %104 : vector<16x32xf32>
    %c0_66 = arith.constant 0 : index
    %c0_67 = arith.constant 0 : index
    %106 = vector.load %arg7[%c0_66, %c0_67] : memref<16x32xf32, #tpu.memory_space<vmem>>, vector<16x32xf32>
    tpu.vector_store %arg7[%c0_66, %c0_67], %105 {strides = array<i32>} : memref<16x32xf32, #tpu.memory_space<vmem>>, vector<16x32xf32>,
    return
  }
}

</mosaic_0001>

<bundles_post_ra>
// kernel: tpu_custom_call.1
= control target key start
LH: loop header
LB: loop body
LE: loop exit
PB: predicated region body
PF: predicated region fallthrough
CT: control target
= control target key end

     0   :  { %12 = vsyncpa [#allocation3], 0  ;;  %s3090_s0 = inlined_call_operand.vmem [shape: s32[16,1], index: 0, kind: input, shape index: {}]   ;;  %s3091_s1 = inlined_call_operand.vmem [shape: f32[50,32], index: 1, kind: input, shape index: {}]   ;;  %s3092_s2 = inlined_call_operand.vmem [shape: f32[8,32], index: 2, kind: input, shape index: {}]   ;;  %s3093_s3 = inlined_call_operand.vmem [shape: f32[64,64], index: 3, kind: input, shape index: {}]   ;;  %s3094_s4 = inlined_call_operand.vmem [shape: f32[2,8,24], index: 4, kind: input, shape index: {}]   ;;  %s3095_s5 = inlined_call_operand.hbm [shape: f32[2,4,8,32], index: 5, kind: input, shape index: {}]   ;;  %s3096_s6 = inlined_call_operand.vmem [shape: f32[2,1,32], index: 6, kind: input, shape index: {}]   ;;  %s3097_s7 = inlined_call_operand.hbm [shape: f32[16,32], index: 7, kind: output, shape index: {}]  }
   0x1   :  { %13 = vsyncpa [#allocation4], 0  ;;  %s2663_s24 = smov [#allocation2]   ;;  %s2615_s28 = scalar_lea.hbm %s3095_s5, 1024 }
   0x2   :  { %s29_s25 = sshll.u32 %s2663_s24, 4  ;;  %p2616_p0 = scmp.ne.s32.totalorder %s3095_s5, %s2615_s28  ;;  %s30_s25 = int_to_ptr.vmem [resolvable:$true] %s29_s25 }
   0x3   :  { %p2619_p1 = scmp.lt.u32.totalorder %s2615_s28, %s3095_s5 }
   0x5   :  { %p2621_p2 = pnand %p2619_p1, %p2616_p0 }
   0x7   :  { %2624 = shalt.err (!%p2621_p2)
}
   0x8   :  { %s2625_s10 = scalar_lea.vmem %s30_s25, 1024  ;;  %p2630_p4 = scmp.lt.s32.totalorder %s30_s25, %s30_s25 }
   0x9   :  { %p2626_p3 = scmp.ne.s32.totalorder %s30_s25, %s2625_s10  ;;  %p2631_p5 = scmp.lt.s32.totalorder %s2625_s10, %s2625_s10 }
   0xb   :  { %p2632_p6 = por %p2631_p5, %p2630_p4 }
   0xd   :  { %p2633_p7 = pnand %p2632_p6, %p2626_p3 }
   0xf   :  { %2636 = shalt.err (!%p2633_p7)
}
  0x10   :  { %s2664_s11 = smov 128   ;;  %s2665_s12 = smov 8  }
  0x11   :  { %35 = dma.hbm_to_vmem [thread:$0]  %s3095_s5, 1024, %s30_s25, [#allocation3], %s2664_s11, %s2664_s11, %s2665_s12  }
  0x12   :  { %2659 = dma.done.wait [#allocation3], 1024  }
  0x13   :  { %2660 = vsyncadd [#allocation3], 4294966272  ;;  %v2666_v0 = vmov 0   ;;  %v41_v1 = vld [vmem:[%s3090_s0] sm:$0xff]  ;;  %v58_v3 = vld [vmem:[%s3091_s1 + $0x8] sm:$0xff]  ;;  %vm72_vm0 = vcmask 1041408   ;;  %v43_v13 = vlaneseq }
  0x14   :  { %2470 = vset.pattern.permute.xlu0 %v2666_v0  ;;  %v57_v2 = vld [vmem:[%s3091_s1] sm:$0xff]  ;;  %v59_v4 = vld [vmem:[%s3091_s1 + $0x10] sm:$0xff]  ;;  %v60_v5 = vld [vmem:[%s3091_s1 + $0x18] sm:$0xff]  ;;  %vm65_vm1 = vcmask 408576   ;;  %v2667_v16 = vmov 0.0   ;;  %vm174_vm4 = vcmask 64512  }
  0x15   :  { %46 = vperm.xlu0 %2470, %v41_v1   ;;  %v42_v6 = vld [vmem:[%s3090_s0 + $0x8] sm:$0xff]  ;;  %v2349_v7 = vpack.c.bf16 %v58_v3, %v57_v2  ;;  %v2353_v8 = vpack.c.bf16 %v60_v5, %v59_v4  ;;  %v61_v9 = vld [vmem:[%s3091_s1 + $0x20] sm:$0xff]  ;;  %v63_v12 = vld [vmem:[%s3091_s1 + $0x30] sm:$0x3]  ;;  %v44_v14 = vand.u32 127, %v43_v13  ;;  %s2668_s13 = smov 112  }
  0x16   :  { %v62_v10 = vld [vmem:[%s3091_s1 + $0x28] sm:$0xff]  ;;  %v173_v20 = vld [vmem:[%s3094_s4] sm:$0xff]  ;;  %s2669_s14 = smov 120   ;;  %s2670_s15 = smov 104   ;;  %vm2783_vm5 = vmpackc.low %vm174_vm4, %vm174_vm4  ;;  %vm457_vm6 = vcmask 523264   ;;  %vm1928_vm7 = vcmask 261120  }
  0x17   :  { %2350 = vmatprep.subr.bf16.mxu0 %v2349_v7  ;;  %v2357_v11 = vpack.c.bf16 %v62_v10, %v61_v9  ;;  %2169 = vmatprep.subr.mxu1 %v173_v20  ;;  %v64_v21 = vld [vmem:[%s3092_s2] sm:$0xff]  ;;  %v2823_v61 = vld [vmem:[%s3093_s3 + $0x8] sm:$0xff]  ;;  %v2836_v4 = vld [vmem:[%s3093_s3 + $0x10] sm:$0xff]  ;;  %s2671_s1 = smov [#allocation5]  }
  0x18   :  { %2352 = vmatpush3.bf16.msra.mxu0 %v2349_v7  ;;  %2170 = vmatpush3.msra.mxu1 %v173_v20  ;;  %v2828_v62 = vld [vmem:[%s3093_s3] sm:$0xff]  ;;  %v2842_v7 = vld [vmem:[%s3093_s3 + $0x18] sm:$0xff]  ;;  %s1936_s10 = sshll.u32 %s2671_s1, 4  ;;  %s1937_s10 = int_to_ptr.vmem [resolvable:$true] %s1936_s10 }
  0x19   :  { %49 = vperm.xlu0 %2470, %v42_v6   ;;  %2354 = vmatprep.subr.bf16.mxu0 %v2353_v8  ;;  %v2848_v10 = vld [vmem:[%s3093_s3 + $0x20] sm:$0xff]  ;;  %p2642_p9 = scmp.lt.s32.totalorder %s1937_s10, %s1937_s10 }
  0x1c   :  { %2356 = vmatpush3.bf16.msra.mxu0 %v2353_v8 }
  0x1d   :  { %2358 = vmatprep.subr.bf16.mxu0 %v2357_v11 }
  0x20   :  { %2360 = vmatpush3.bf16.msra.mxu0 %v2357_v11 }
  0x21   :  { %2164 = vmatprep.subr.msk.mxu0 %vm72_vm0, %v63_v12 }
  0x24   :  { %2165 = vmatpush3.msk.msra.mxu0 %vm72_vm0, %v63_v12 }
  0x94   :  { %v47_v15 = vpop.permute.xlu0 %46 }
  0x95   :  { %vm51_vm2 = vcmp.eq.s32.totalorder %v44_v14, %v47_v15 }
  0x96   :  { %v1948_v17 = vsel %vm51_vm2, 1.0, %v2667_v16 }
  0x97   :  { %2166 = vmatprep.mubr.msk.f32.mxu0 %vm65_vm1, %v1948_v17  ;;  %v2863_v17 = vld [vmem:[%s3093_s3 + $0x30] sm:$0xff] }
  0x98   :  { %v50_v18 = vpop.permute.xlu0 %49 }
  0x99   :  { %vm52_vm3 = vcmp.eq.s32.totalorder %v44_v14, %v50_v18  ;;  %v2855_v14 = vld [vmem:[%s3093_s3 + $0x28] sm:$0xff] }
  0x9a   :  { %v1949_v19 = vsel %vm52_vm3, 1.0, %v2667_v16 }
  0x9b   :  { %2167 = vmatmul.mubr.msk.f32.vlgmr.msra.gmra.mrb[0].mxu0 %vm65_vm1, %v1949_v19 }
 0x16e   :  { %v2168_v22 = vpop.f32.mrb[0].mxu0 }
 0x16f   :  { %v142_v23 = vpop.f32.mrb[1].mxu0  ;;  %v148_v25 = vadd.f32 %v2168_v22, %v64_v21  ;;  %v2872_v22 = vld [vmem:[%s3093_s3 + $0x38] sm:$0xff] }
 0x170   :  { %v143_v24 = vadd.f32 %v142_v23, %v64_v21 }
 0x172   :  { %165 = vrot.lane.b32.xlu0 %v143_v24, %s2668_s13  ;;  %161 = vrot.lane.b32.xlu1 %v143_v24, %s2669_s14 }
 0x173   :  { %2171 = vmatprep.mubr.msk.f32.mxu1 %vm174_vm4, %v143_v24 }
 0x174   :  { %2172 = vmatmul.mubr.msk.f32.vlgmr.msra.gmra.mrb[0].mxu1 %vm174_vm4, %v148_v25 }
 0x176   :  { %169 = vrot.lane.b32.xlu0 %v143_v24, %s2670_s15  ;;  %163 = vrot.lane.b32.xlu1 %v148_v25, %s2669_s14 }
 0x17a   :  { %167 = vrot.lane.b32.xlu1 %v148_v25, %s2668_s13 }
 0x17e   :  { %171 = vrot.lane.b32.xlu1 %v148_v25, %s2670_s15 }
 0x1e4   :  { %v162_v26 = vpop.permute.xlu1 %161  ;;  %v166_v27 = vpop.permute.xlu0 %165 }
 0x1e5   :  { %2174 = vmatprep.mubr.msk.f32.mxu1 %vm174_vm4, %v162_v26 }
 0x1e8   :  { %v164_v28 = vpop.permute.xlu1 %163  ;;  %v170_v30 = vpop.permute.xlu0 %169 }
 0x1e9   :  { %2175 = vmatmul.mubr.msk.f32.gmra.mrb[2].mxu1 %vm174_vm4, %v164_v28 }
 0x1ea   :  { %2177 = vmatprep.mubr.msk.f32.mxu1 %vm174_vm4, %v166_v27 }
 0x1ec   :  { %v168_v29 = vpop.permute.xlu1 %167 }
 0x1ed   :  { %2178 = vmatmul.mubr.msk.f32.gmra.mrb[4].mxu1 %vm174_vm4, %v168_v29 }
 0x1ee   :  { %2180 = vmatprep.mubr.msk.f32.mxu1 %vm174_vm4, %v170_v30 }
 0x1f0   :  { %v172_v31 = vpop.permute.xlu1 %171 }
 0x1f1   :  { %2181 = vmatmul.mubr.msk.f32.gmra.mrb[6].mxu1 %vm174_vm4, %v172_v31 }
 0x247   :  { %v2173_v32 = vpop.f32.mrb[0].mxu1 }
 0x248   :  { %v257_v33 = vpop.f32.mrb[1].mxu1 }
 0x249   :  { %v2774_v34 = vpack.i.bf16 %v2173_v32, %v257_v33  ;;  %2199 = vmatprep.mubr.msk.f32.mxu1 %vm174_vm4, %v257_v33 }
 0x24b   :  { %2472 = vrot.lane.b32.xlu0 %v2774_v34, %s2669_s14 }
 0x2bc   :  { %v2176_v35 = vpop.f32.mrb[2].mxu1 }
 0x2bd   :  { %v2473_v36 = vpop.permute.xlu0 %2472  ;;  %v267_v37 = vpop.f32.mrb[3].mxu1 }
 0x2be   :  { %v2475_v38 = vunpack.i.h.bf16 %v2473_v36  ;;  %v2474_v39 = vunpack.i.l.bf16 %v2473_v36  ;;  %v2779_v40 = vpack.i.bf16 %v2176_v35, %v267_v37 }
 0x2c0   :  { %v2361_v42 = vpack.c.bf16 %v2475_v38, %v2474_v39  ;;  %2477 = vrot.lane.b32.xlu1 %v2779_v40, %s2669_s14  ;;  %v2179_v43 = vpop.f32.mrb[4].mxu1 }
 0x2c1   :  { %v277_v44 = vpop.f32.mrb[5].mxu1 }
 0x2c2   :  { %v2789_v45 = vpack.i.bf16 %v2179_v43, %v277_v44  ;;  %2363 = vmatprep.subr.msk.bf16.mxu1 %vm2783_vm5, %v2361_v42 }
 0x2c3   :  { %2366 = vmatpush3.bf16.xpose.msk.msra.mxu1 %vm2783_vm5, %v2361_v42 }
 0x2c4   :  { %2482 = vrot.lane.b32.xlu0 %v2789_v45, %s2669_s14  ;;  %v2182_v46 = vpop.f32.mrb[6].mxu1 }
 0x2c5   :  { %v287_v47 = vpop.f32.mrb[7].mxu1 }
 0x2c6   :  { %v2797_v48 = vpack.i.bf16 %v2182_v46, %v287_v47 }
 0x2c8   :  { %2487 = vrot.lane.b32.xlu1 %v2797_v48, %s2669_s14 }
 0x332   :  { %v2478_v49 = vpop.permute.xlu1 %2477 }
 0x333   :  { %v2480_v50 = vunpack.i.h.bf16 %v2478_v49  ;;  %v2479_v51 = vunpack.i.l.bf16 %v2478_v49 }
 0x335   :  { %v2367_v52 = vpack.c.bf16 %v2480_v50, %v2479_v51 }
 0x336   :  { %v2483_v53 = vpop.permute.xlu0 %2482 }
 0x337   :  { %v2485_v54 = vunpack.i.h.bf16 %v2483_v53  ;;  %v2484_v55 = vunpack.i.l.bf16 %v2483_v53  ;;  %2369 = vmatprep.subr.msk.bf16.mxu1 %vm2783_vm5, %v2367_v52 }
 0x338   :  { %2372 = vmatpush3.bf16.xpose.msk.msra.mxu1 %vm2783_vm5, %v2367_v52 }
 0x339   :  { %v2373_v56 = vpack.c.bf16 %v2485_v54, %v2484_v55 }
 0x33a   :  { %v2488_v57 = vpop.permute.xlu1 %2487 }
 0x33b   :  { %v2490_v58 = vunpack.i.h.bf16 %v2488_v57  ;;  %v2489_v59 = vunpack.i.l.bf16 %v2488_v57  ;;  %2375 = vmatprep.subr.msk.bf16.mxu1 %vm2783_vm5, %v2373_v56 }
 0x33d   :  { %v2379_v60 = vpack.c.bf16 %v2490_v58, %v2489_v59 }
 0x340   :  { %2378 = vmatpush3.bf16.xpose.msk.msra.mxu1 %vm2783_vm5, %v2373_v56 }
 0x341   :  { %2381 = vmatprep.subr.msk.bf16.mxu1 %vm2783_vm5, %v2379_v60 }
 0x348   :  { %2384 = vmatpush3.bf16.xpose.msk.msra.mxu1 %vm2783_vm5, %v2379_v60 }
 0x34f   :  { %2200 = vmatmul.mubr.msk.f32.vlgmr.msra.gmra.mrb[8].mxu1 %vm174_vm4, %v2173_v32 }
 0x350   :  { %2202 = vmatprep.mubr.msk.f32.mxu1 %vm174_vm4, %v267_v37 }
 0x353   :  { %2203 = vmatmul.mubr.msk.f32.gmra.mrb[10].mxu1 %vm174_vm4, %v2176_v35 }
 0x354   :  { %2205 = vmatprep.mubr.msk.f32.mxu1 %vm174_vm4, %v277_v44 }
 0x357   :  { %2206 = vmatmul.mubr.msk.f32.gmra.mrb[12].mxu1 %vm174_vm4, %v2179_v43 }
 0x358   :  { %2208 = vmatprep.mubr.msk.f32.mxu1 %vm174_vm4, %v287_v47 }
 0x35b   :  { %2209 = vmatmul.mubr.msk.f32.gmra.mrb[14].mxu1 %vm174_vm4, %v2182_v46 }
 0x422   :  { %v2201_v63 = vpop.f32.mrb[8].mxu1 }
 0x423   :  { %v424_v0 = vadd.f32 %v2201_v63, %v2823_v61  ;;  %v418_v1 = vpop.f32.mrb[9].mxu1 }
 0x424   :  { %v419_v2 = vadd.f32 %v418_v1, %v2828_v62 }
 0x425   :  { %v461_v3 = vsel %vm457_vm6, %v424_v0, -inf }
 0x426   :  { %462 = vmax.xlane.f32.xlu1 %v461_v3  ;;  %v2204_v5 = vpop.f32.mrb[10].mxu1  ;;  %v458_v6 = vsel %vm457_vm6, %v419_v2, -inf }
 0x427   :  { %v428_v8 = vpop.f32.mrb[11].mxu1  ;;  %459 = vmax.xlane.f32.xlu0 %v458_v6  ;;  %v434_v11 = vadd.f32 %v2204_v5, %v2842_v7 }
 0x428   :  { %v429_v9 = vadd.f32 %v428_v8, %v2836_v4 }
 0x429   :  { %v467_v21 = vsel %vm457_vm6, %v434_v11, -inf }
 0x42a   :  { %v2207_v12 = vpop.f32.mrb[12].mxu1  ;;  %v464_v13 = vsel %vm457_vm6, %v429_v9, -inf }
 0x42b   :  { %v438_v15 = vpop.f32.mrb[13].mxu1  ;;  %465 = vmax.xlane.f32.xlu0 %v464_v13  ;;  %v444_v18 = vadd.f32 %v2207_v12, %v2855_v14 }
 0x42c   :  { %v2858_v16 = vadd.f32 %v438_v15, %v2848_v10 }
 0x42d   :  { %v473_v27 = vsel %vm457_vm6, %v444_v18, -inf }
 0x42e   :  { %v2210_v19 = vpop.f32.mrb[14].mxu1  ;;  %v470_v20 = vsel %vm457_vm6, %v2858_v16, -inf }
 0x42f   :  { %v448_v23 = vpop.f32.mrb[15].mxu1  ;;  %471 = vmax.xlane.f32.xlu1 %v470_v20  ;;  %468 = vmax.xlane.f32.xlu0 %v467_v21  ;;  %v2878_v25 = vadd.f32 %v2210_v19, %v2872_v22 }
 0x430   :  { %v2875_v24 = vadd.f32 %v448_v23, %v2863_v17 }
 0x431   :  { %v479_v28 = vsel %vm457_vm6, %v2878_v25, -inf }
 0x432   :  { %v476_v26 = vsel %vm457_vm6, %v2875_v24, -inf }
 0x433   :  { %477 = vmax.xlane.f32.xlu1 %v476_v26  ;;  %474 = vmax.xlane.f32.xlu0 %v473_v27 }
 0x437   :  { %480 = vmax.xlane.f32.xlu0 %v479_v28 }
 0x444   :  { %2492 = vrot.lane.b32.xlu1 %v2774_v34, %s2668_s13 }
 0x44d   :  { %2497 = vrot.lane.b32.xlu0 %v2779_v40, %s2668_s13 }
 0x4b3   :  { %v463_v29 = vpop.xlane.xlu1 %462 }
 0x4b4   :  { %v483_v30 = vsub.f32 %v424_v0, %v463_v29  ;;  %v460_v31 = vpop.xlane.xlu0 %459 }
 0x4b5   :  { %v482_v32 = vsub.f32 %v419_v2, %v460_v31 }
 0x4b6   :  { %v492_v33 = vmul.f32 1.442695, %v483_v30 }
 0x4b7   :  { %v490_v35 = vmul.f32 1.442695, %v482_v32 }
 0x4b8   :  { %2551 = vpow2.f32 %v492_v33  ;;  %v466_v36 = vpop.xlane.xlu0 %465 }
 0x4b9   :  { %2553 = vpow2.f32 %v490_v35  ;;  %v484_v37 = vsub.f32 %v429_v9, %v466_v36 }
 0x4bb   :  { %v494_v38 = vmul.f32 1.442695, %v484_v37 }
 0x4bc   :  { %v472_v39 = vpop.xlane.xlu1 %471  ;;  %v469_v42 = vpop.xlane.xlu0 %468 }
 0x4bd   :  { %2555 = vpow2.f32 %v494_v38  ;;  %v485_v43 = vsub.f32 %v434_v11, %v469_v42  ;;  %v486_v8 = vsub.f32 %v2858_v16, %v472_v39 }
 0x4bf   :  { %v496_v44 = vmul.f32 1.442695, %v485_v43  ;;  %v498_v9 = vmul.f32 1.442695, %v486_v8 }
 0x4c0   :  { %v478_v34 = vpop.xlane.xlu1 %477  ;;  %v475_v46 = vpop.xlane.xlu0 %474 }
 0x4c1   :  { %v487_v47 = vsub.f32 %v444_v18, %v475_v46  ;;  %2557 = vpow2.f32 %v496_v44  ;;  %v488_v11 = vsub.f32 %v2875_v24, %v478_v34 }
 0x4c2   :  { %v2889_v40 = vpop.eup %2551 }
 0x4c3   :  { %v2891_v49 = vpop.eup %2553  ;;  %v500_v50 = vmul.f32 1.442695, %v487_v47  ;;  %v509_v51 = vsel %vm457_vm6, %v2889_v40, 0.0  ;;  %v502_v12 = vmul.f32 1.442695, %v488_v11 }
 0x4c4   :  { %v2493_v52 = vpop.permute.xlu1 %2492  ;;  %510 = vadd.xlane.f32.xlu0 %v509_v51  ;;  %v481_v53 = vpop.xlane.xlu0 %480  ;;  %v506_v54 = vsel %vm457_vm6, %v2891_v49, 0.0  ;;  %v1993_v11 = vld [vmem:[%s3096_s6] ss:$0 sm:$0xff] }
 0x4c5   :  { %v2495_v55 = vunpack.i.h.bf16 %v2493_v52  ;;  %v2494_v56 = vunpack.i.l.bf16 %v2493_v52  ;;  %507 = vadd.xlane.f32.xlu1 %v506_v54  ;;  %2559 = vpow2.f32 %v500_v50  ;;  %v489_v13 = vsub.f32 %v2878_v25, %v481_v53 }
 0x4c6   :  { %2561 = vpow2.f32 %v498_v9  ;;  %v1994_v9 = vld [vmem:[%s3094_s4 + $0x8] sm:$0xff] }
 0x4c7   :  { %v2897_v57 = vpop.eup %2555  ;;  %v2385_v58 = vpack.c.bf16 %v2495_v55, %v2494_v56  ;;  %2563 = vpow2.f32 %v502_v12  ;;  %v504_v15 = vmul.f32 1.442695, %v489_v13 }
 0x4c8   :  { %v2498_v59 = vpop.permute.xlu0 %2497  ;;  %v512_v60 = vsel %vm457_vm6, %v2897_v57, 0.0 }
 0x4c9   :  { %v2500_v63 = vunpack.i.h.bf16 %v2498_v59  ;;  %v2499_v0 = vunpack.i.l.bf16 %v2498_v59  ;;  %2386 = vmatprep.subr.bf16.mxu0 %v2385_v58  ;;  %2441 = vmatprep.subr.bf16.mxu1 %v2385_v58  ;;  %2565 = vpow2.f32 %v504_v15 }
 0x4ca   :  { %513 = vadd.xlane.f32.xlu1 %v512_v60  ;;  %2388 = vmatpush3.bf16.msra.mxu0 %v2385_v58 }
 0x4cb   :  { %v2389_v1 = vpack.c.bf16 %v2500_v63, %v2499_v0  ;;  %2445 = vmatpush3.bf16.msra.mxu1 %v2385_v58  ;;  %v2901_v2 = vpop.eup %2557  ;;  %v699_v58 = vld [vmem:[#allocation2] sm:$0xff] }
 0x4cc   :  { %v515_v3 = vsel %vm457_vm6, %v2901_v2, 0.0 }
 0x4cd   :  { %2390 = vmatprep.subr.bf16.mxu0 %v2389_v1  ;;  %2442 = vmatprep.subr.bf16.mxu1 %v2389_v1 }
 0x4ce   :  { %516 = vadd.xlane.f32.xlu0 %v515_v3  ;;  %2392 = vmatpush3.bf16.msra.mxu0 %v2389_v1 }
 0x4cf   :  { %2446 = vmatpush3.bf16.msra.mxu1 %v2389_v1  ;;  %v2905_v5 = vpop.eup %2559  ;;  %v865_v1 = vld [vmem:[#allocation2 + $0x10] sm:$0xff] }
 0x4d0   :  { %v521_v6 = vsel %vm457_vm6, %v2905_v5, 0.0  ;;  %v2562_v18 = vpop.eup %2561 }
 0x4d1   :  { %v518_v19 = vsel %vm457_vm6, %v2562_v18, 0.0  ;;  %v2564_v20 = vpop.eup %2563 }
 0x4d2   :  { %522 = vadd.xlane.f32.xlu0 %v521_v6 }
 0x4db   :  { %2502 = vrot.lane.b32.xlu1 %v2789_v45, %s2668_s13  ;;  %v524_v45 = vsel %vm457_vm6, %v2564_v20, 0.0 }
 0x4e8   :  { %2507 = vrot.lane.b32.xlu0 %v2797_v48, %s2668_s13  ;;  %v2566_v48 = vpop.eup %2565 }
 0x4e9   :  { %v527_v16 = vsel %vm457_vm6, %v2566_v48, 0.0 }
 0x4ff   :  { %519 = vadd.xlane.f32.xlu1 %v518_v19 }
 0x503   :  { %525 = vadd.xlane.f32.xlu1 %v524_v45 }
 0x507   :  { %528 = vadd.xlane.f32.xlu1 %v527_v16 }
 0x551   :  { %v511_v23 = vpop.xlane.xlu0 %510 }
 0x552   :  { %v508_v21 = vpop.xlane.xlu1 %507 }
 0x553   :  { %2567 = vrcp.f32 %v508_v21 }
 0x554   :  { %2569 = vrcp.f32 %v511_v23 }
 0x557   :  { %v514_v24 = vpop.xlane.xlu1 %513 }
 0x558   :  { %2571 = vrcp.f32 %v514_v24 }
 0x55b   :  { %v2503_v25 = vpop.permute.xlu1 %2502  ;;  %v517_v26 = vpop.xlane.xlu0 %516 }
 0x55c   :  { %v2505_v27 = vunpack.i.h.bf16 %v2503_v25  ;;  %v2504_v28 = vunpack.i.l.bf16 %v2503_v25  ;;  %2573 = vrcp.f32 %v517_v26 }
 0x55d   :  { %v2568_v29 = vpop.eup %2567 }
 0x55e   :  { %v2393_v30 = vpack.c.bf16 %v2505_v27, %v2504_v28  ;;  %v538_v31 = vmul.f32 %v2568_v29, %v2891_v49  ;;  %v2570_v38 = vpop.eup %2569 }
 0x55f   :  { %v523_v32 = vpop.xlane.xlu0 %522  ;;  %v539_v42 = vmul.f32 %v2570_v38, %v2889_v40 }
 0x560   :  { %2394 = vmatprep.subr.bf16.mxu0 %v2393_v30  ;;  %2443 = vmatprep.subr.bf16.mxu1 %v2393_v30  ;;  %2575 = vrcp.f32 %v523_v32 }
 0x561   :  { %2396 = vmatpush3.bf16.msra.mxu0 %v2393_v30  ;;  %2447 = vmatpush3.bf16.msra.mxu1 %v2393_v30 }
 0x562   :  { %2227 = vmatprep.mubr.msk.f32.mxu0 %vm457_vm6, %v538_v31  ;;  %v2572_v39 = vpop.eup %2571 }
 0x563   :  { %v2508_v33 = vpop.permute.xlu0 %2507  ;;  %v540_v44 = vmul.f32 %v2572_v39, %v2897_v57  ;;  %v701_v57 = vld [vmem:[#allocation2 + $0x8] sm:$0xff] }
 0x564   :  { %v2510_v35 = vunpack.i.h.bf16 %v2508_v33  ;;  %v2509_v36 = vunpack.i.l.bf16 %v2508_v33 }
 0x566   :  { %v2397_v37 = vpack.c.bf16 %v2510_v35, %v2509_v36  ;;  %v2574_v43 = vpop.eup %2573 }
 0x567   :  { %v541_v34 = vmul.f32 %v2574_v43, %v2901_v2  ;;  %v950_v2 = vld [vmem:[#allocation2 + $0x18] sm:$0xff] }
 0x568   :  { %2398 = vmatprep.subr.bf16.mxu0 %v2397_v37  ;;  %2444 = vmatprep.subr.bf16.mxu1 %v2397_v37 }
 0x569   :  { %2400 = vmatpush3.bf16.msra.mxu0 %v2397_v37  ;;  %2448 = vmatpush3.bf16.msra.mxu1 %v2397_v37 }
 0x56a   :  { %v2576_v50 = vpop.eup %2575  ;;  %2239 = vmatprep.subr.mxu0 %v701_v57  ;;  %2259 = vmatprep.subr.mxu1 %v1994_v9 }
 0x56b   :  { %v543_v52 = vmul.f32 %v2576_v50, %v2905_v5 }
 0x56c   :  { %2228 = vmatmul.mubr.msk.f32.vlgmr.msra.gmra.mrb[2].mxu0 %vm457_vm6, %v539_v42 }
 0x56d   :  { %2230 = vmatprep.mubr.msk.f32.mxu0 %vm457_vm6, %v540_v44  ;;  %2240 = vmatpush3.msra.mxu0 %v701_v57 }
 0x56e   :  { %2244 = vmatprep.subr.mxu0 %v699_v58 }
 0x570   :  { %2231 = vmatmul.mubr.msk.f32.gmra.mrb[4].mxu0 %vm457_vm6, %v541_v34 }
 0x58c   :  { %v520_v46 = vpop.xlane.xlu1 %519 }
 0x58d   :  { %2577 = vrcp.f32 %v520_v46 }
 0x590   :  { %v526_v47 = vpop.xlane.xlu1 %525 }
 0x591   :  { %2579 = vrcp.f32 %v526_v47 }
 0x594   :  { %v529_v49 = vpop.xlane.xlu1 %528 }
 0x595   :  { %2581 = vrcp.f32 %v529_v49 }
 0x597   :  { %v2578_v40 = vpop.eup %2577 }
 0x598   :  { %v542_v51 = vmul.f32 %v2578_v40, %v2562_v18 }
 0x59a   :  { %2233 = vmatprep.mubr.msk.f32.mxu0 %vm457_vm6, %v542_v51 }
 0x59b   :  { %v2580_v53 = vpop.eup %2579  ;;  %2234 = vmatmul.mubr.msk.f32.gmra.mrb[6].mxu0 %vm457_vm6, %v543_v52 }
 0x59c   :  { %v544_v54 = vmul.f32 %v2580_v53, %v2564_v20 }
 0x59e   :  { %2236 = vmatprep.mubr.msk.f32.mxu1 %vm457_vm6, %v544_v54 }
 0x59f   :  { %v2582_v55 = vpop.eup %2581 }
 0x5a0   :  { %v545_v56 = vmul.f32 %v2582_v55, %v2566_v48 }
 0x5a2   :  { %2237 = vmatmul.mubr.msk.f32.vlgmr.msra.gmra.mrb[16].mxu1 %vm457_vm6, %v545_v56 }
 0x5a3   :  { %2260 = vmatpush3.msra.mxu1 %v1994_v9 }
 0x63f   :  { %v2229_v59 = vpop.f32.mrb[2].mxu0 }
 0x640   :  { %v660_v60 = vpop.f32.mrb[3].mxu0 }
 0x643   :  { %v2232_v63 = vpop.f32.mrb[4].mxu0 }
 0x644   :  { %v670_v0 = vpop.f32.mrb[5].mxu0 }
 0x645   :  { %2241 = vmatprep.mubr.msk.f32.mxu0 %vm174_vm4, %v670_v0 }
 0x646   :  { %2242 = vmatmul.mubr.msk.f32.vlgmr.msra.gmra.mrb[8].mxu0 %vm174_vm4, %v2232_v63 }
 0x647   :  { %2246 = vmatprep.mubr.msk.f32.mxu0 %vm174_vm4, %v660_v60  ;;  %2245 = vmatpush3.msra.mxu0 %v699_v58 }
 0x648   :  { %2249 = vmatprep.subr.mxu0 %v865_v1 }
 0x64e   :  { %2247 = vmatmul.mubr.msk.f32.vlgmr.msra.gmra.mrb[8].mxu0 %vm174_vm4, %v2229_v59 }
 0x64f   :  { %2250 = vmatpush3.msra.mxu0 %v865_v1 }
 0x650   :  { %2254 = vmatprep.subr.mxu0 %v950_v2 }
 0x66e   :  { %v2235_v3 = vpop.f32.mrb[6].mxu0 }
 0x66f   :  { %v680_v5 = vpop.f32.mrb[7].mxu0 }
 0x670   :  { %2251 = vmatprep.mubr.msk.f32.mxu0 %vm174_vm4, %v680_v5 }
 0x671   :  { %2252 = vmatmul.mubr.msk.f32.vlgmr.msra.gmra.mrb[8].mxu0 %vm174_vm4, %v2235_v3 }
 0x672   :  { %2255 = vmatpush3.msra.mxu0 %v950_v2 }
 0x675   :  { %v2238_v6 = vpop.f32.mrb[16].mxu1 }
 0x676   :  { %v690_v8 = vpop.f32.mrb[17].mxu1 }
 0x677   :  { %2256 = vmatprep.mubr.msk.f32.mxu0 %vm174_vm4, %v690_v8 }
 0x679   :  { %2257 = vmatmul.mubr.msk.f32.vlgmr.msra.gmra.mrb[8].mxu0 %vm174_vm4, %v2238_v6 }
 0x74c   :  { %v2258_v12 = vpop.f32.mrb[8].mxu0 }
 0x74d   :  { %v1042_v13 = vadd.f32 %v2258_v12, %v1993_v11  ;;  %v1023_v15 = vpop.f32.mrb[9].mxu0 }
 0x74e   :  { %v1041_v18 = vadd.f32 %v1993_v11, %v1023_v15 }
 0x74f   :  { %1047 = vrot.lane.b32.xlu0 %v1042_v13, %s2669_s14 }
 0x750   :  { %1045 = vrot.lane.b32.xlu1 %v1041_v18, %s2669_s14  ;;  %2261 = vmatprep.mubr.msk.f32.mxu1 %vm174_vm4, %v1041_v18 }
 0x751   :  { %2262 = vmatmul.mubr.msk.f32.vlgmr.msra.gmra.mrb[18].mxu1 %vm174_vm4, %v1042_v13 }
 0x753   :  { %1049 = vrot.lane.b32.xlu0 %v1041_v18, %s2668_s13 }
 0x754   :  { %1051 = vrot.lane.b32.xlu1 %v1042_v13, %s2668_s13 }
 0x757   :  { %1053 = vrot.lane.b32.xlu0 %v1041_v18, %s2670_s15 }
 0x758   :  { %1055 = vrot.lane.b32.xlu1 %v1042_v13, %s2670_s15 }
 0x7c1   :  { %v1048_v19 = vpop.permute.xlu0 %1047 }
 0x7c2   :  { %v1046_v20 = vpop.permute.xlu1 %1045 }
 0x7c3   :  { %2264 = vmatprep.mubr.msk.f32.mxu1 %vm174_vm4, %v1046_v20 }
 0x7c4   :  { %2265 = vmatmul.mubr.msk.f32.gmra.mrb[20].mxu1 %vm174_vm4, %v1048_v19 }
 0x7c5   :  { %v1050_v45 = vpop.permute.xlu0 %1049 }
 0x7c6   :  { %v1052_v48 = vpop.permute.xlu1 %1051  ;;  %2267 = vmatprep.mubr.msk.f32.mxu1 %vm174_vm4, %v1050_v45 }
 0x7c8   :  { %2268 = vmatmul.mubr.msk.f32.gmra.mrb[22].mxu1 %vm174_vm4, %v1052_v48 }
 0x7c9   :  { %v1054_v16 = vpop.permute.xlu0 %1053 }
 0x7ca   :  { %v1056_v21 = vpop.permute.xlu1 %1055  ;;  %2270 = vmatprep.mubr.msk.f32.mxu1 %vm174_vm4, %v1054_v16 }
 0x7cc   :  { %2271 = vmatmul.mubr.msk.f32.gmra.mrb[24].mxu1 %vm174_vm4, %v1056_v21 }
 0x824   :  { %v2263_v23 = vpop.f32.mrb[18].mxu1 }
 0x825   :  { %v1141_v24 = vpop.f32.mrb[19].mxu1 }
 0x826   :  { %v2960_v25 = vpack.i.bf16 %v2263_v23, %v1141_v24  ;;  %2289 = vmatprep.mubr.msk.f32.mxu1 %vm174_vm4, %v1141_v24 }
 0x828   :  { %2512 = vrot.lane.b32.xlu0 %v2960_v25, %s2669_s14 }
 0x897   :  { %v2266_v26 = vpop.f32.mrb[20].mxu1 }
 0x898   :  { %v1151_v27 = vpop.f32.mrb[21].mxu1 }
 0x899   :  { %v2965_v28 = vpack.i.bf16 %v2266_v26, %v1151_v27 }
 0x89a   :  { %v2513_v29 = vpop.permute.xlu0 %2512 }
 0x89b   :  { %v2515_v30 = vunpack.i.h.bf16 %v2513_v29  ;;  %v2514_v31 = vunpack.i.l.bf16 %v2513_v29  ;;  %2517 = vrot.lane.b32.xlu1 %v2965_v28, %s2669_s14  ;;  %v2269_v32 = vpop.f32.mrb[22].mxu1 }
 0x89c   :  { %v1161_v33 = vpop.f32.mrb[23].mxu1 }
 0x89d   :  { %v2401_v35 = vpack.c.bf16 %v2515_v30, %v2514_v31  ;;  %v2969_v36 = vpack.i.bf16 %v2269_v32, %v1161_v33 }
 0x89f   :  { %2403 = vmatprep.subr.msk.bf16.mxu1 %vm2783_vm5, %v2401_v35  ;;  %2522 = vrot.lane.b32.xlu0 %v2969_v36, %s2669_s14  ;;  %v2272_v37 = vpop.f32.mrb[24].mxu1 }
 0x8a0   :  { %v1171_v38 = vpop.f32.mrb[25].mxu1  ;;  %2406 = vmatpush3.bf16.xpose.msk.msra.mxu1 %vm2783_vm5, %v2401_v35 }
 0x8a1   :  { %v2977_v39 = vpack.i.bf16 %v2272_v37, %v1171_v38 }
 0x8a3   :  { %2527 = vrot.lane.b32.xlu1 %v2977_v39, %s2669_s14 }
 0x90d   :  { %v2518_v42 = vpop.permute.xlu1 %2517 }
 0x90e   :  { %v2520_v43 = vunpack.i.h.bf16 %v2518_v42  ;;  %v2519_v44 = vunpack.i.l.bf16 %v2518_v42 }
 0x910   :  { %v2407_v34 = vpack.c.bf16 %v2520_v43, %v2519_v44 }
 0x911   :  { %v2523_v46 = vpop.permute.xlu0 %2522 }
 0x912   :  { %v2525_v47 = vunpack.i.h.bf16 %v2523_v46  ;;  %v2524_v49 = vunpack.i.l.bf16 %v2523_v46  ;;  %2409 = vmatprep.subr.msk.bf16.mxu1 %vm2783_vm5, %v2407_v34 }
 0x913   :  { %2412 = vmatpush3.bf16.xpose.msk.msra.mxu1 %vm2783_vm5, %v2407_v34 }
 0x914   :  { %v2413_v50 = vpack.c.bf16 %v2525_v47, %v2524_v49 }
 0x915   :  { %v2528_v40 = vpop.permute.xlu1 %2527 }
 0x916   :  { %v2530_v51 = vunpack.i.h.bf16 %v2528_v40  ;;  %v2529_v52 = vunpack.i.l.bf16 %v2528_v40  ;;  %2415 = vmatprep.subr.msk.bf16.mxu1 %vm2783_vm5, %v2413_v50 }
 0x918   :  { %v2419_v53 = vpack.c.bf16 %v2530_v51, %v2529_v52 }
 0x91b   :  { %2418 = vmatpush3.bf16.xpose.msk.msra.mxu1 %vm2783_vm5, %v2413_v50 }
 0x91c   :  { %2421 = vmatprep.subr.msk.bf16.mxu1 %vm2783_vm5, %v2419_v53 }
 0x923   :  { %2424 = vmatpush3.bf16.xpose.msk.msra.mxu1 %vm2783_vm5, %v2419_v53 }
 0x92a   :  { %2290 = vmatmul.mubr.msk.f32.vlgmr.msra.gmra.mrb[26].mxu1 %vm174_vm4, %v2263_v23 }
 0x92b   :  { %2292 = vmatprep.mubr.msk.f32.mxu1 %vm174_vm4, %v1151_v27 }
 0x92e   :  { %2293 = vmatmul.mubr.msk.f32.gmra.mrb[28].mxu1 %vm174_vm4, %v2266_v26 }
 0x92f   :  { %2295 = vmatprep.mubr.msk.f32.mxu1 %vm174_vm4, %v1161_v33 }
 0x932   :  { %2296 = vmatmul.mubr.msk.f32.gmra.mrb[30].mxu1 %vm174_vm4, %v2269_v32 }
 0x933   :  { %2298 = vmatprep.mubr.msk.f32.mxu1 %vm174_vm4, %v1171_v38 }
 0x936   :  { %2299 = vmatmul.mubr.msk.f32.gmra.mrb[32].mxu1 %vm174_vm4, %v2272_v37 }
 0x9fd   :  { %v2291_v54 = vpop.f32.mrb[26].mxu1 }
 0x9fe   :  { %v1308_v55 = vadd.f32 %v2291_v54, %v2823_v61  ;;  %v1302_v56 = vpop.f32.mrb[27].mxu1 }
 0x9ff   :  { %v1303_v41 = vadd.f32 %v1302_v56, %v2828_v62 }
 0xa00   :  { %v1344_v57 = vsel %vm457_vm6, %v1308_v55, -inf }
 0xa01   :  { %1345 = vmax.xlane.f32.xlu1 %v1344_v57  ;;  %v2294_v58 = vpop.f32.mrb[28].mxu1  ;;  %v1341_v59 = vsel %vm457_vm6, %v1303_v41, -inf }
 0xa02   :  { %v1312_v60 = vpop.f32.mrb[29].mxu1  ;;  %1342 = vmax.xlane.f32.xlu0 %v1341_v59  ;;  %v1318_v0 = vadd.f32 %v2294_v58, %v2842_v7 }
 0xa03   :  { %v1313_v63 = vadd.f32 %v1312_v60, %v2836_v4 }
 0xa04   :  { %v1350_v8 = vsel %vm457_vm6, %v1318_v0, -inf }
 0xa05   :  { %v2297_v1 = vpop.f32.mrb[30].mxu1  ;;  %v1347_v2 = vsel %vm457_vm6, %v1313_v63, -inf }
 0xa06   :  { %v1322_v3 = vpop.f32.mrb[31].mxu1  ;;  %1348 = vmax.xlane.f32.xlu0 %v1347_v2  ;;  %v1328_v62 = vadd.f32 %v2297_v1, %v2855_v14 }
 0xa07   :  { %v3008_v61 = vadd.f32 %v1322_v3, %v2848_v10 }
 0xa08   :  { %v1356_v14 = vsel %vm457_vm6, %v1328_v62, -inf }
 0xa09   :  { %v2300_v5 = vpop.f32.mrb[32].mxu1  ;;  %v1353_v6 = vsel %vm457_vm6, %v3008_v61, -inf }
 0xa0a   :  { %v1332_v9 = vpop.f32.mrb[33].mxu1  ;;  %1354 = vmax.xlane.f32.xlu1 %v1353_v6  ;;  %1351 = vmax.xlane.f32.xlu0 %v1350_v8  ;;  %v3018_v7 = vadd.f32 %v2300_v5, %v2872_v22 }
 0xa0b   :  { %v3015_v4 = vadd.f32 %v1332_v9, %v2863_v17 }
 0xa0c   :  { %v1362_v11 = vsel %vm457_vm6, %v3018_v7, -inf }
 0xa0d   :  { %v1359_v10 = vsel %vm457_vm6, %v3015_v4, -inf }
 0xa0e   :  { %1360 = vmax.xlane.f32.xlu1 %v1359_v10  ;;  %1357 = vmax.xlane.f32.xlu0 %v1356_v14 }
 0xa12   :  { %1363 = vmax.xlane.f32.xlu0 %v1362_v11 }
 0xa1f   :  { %2532 = vrot.lane.b32.xlu1 %v2960_v25, %s2668_s13 }
 0xa28   :  { %2537 = vrot.lane.b32.xlu0 %v2965_v28, %s2668_s13 }
 0xa8e   :  { %v1346_v17 = vpop.xlane.xlu1 %1345 }
 0xa8f   :  { %v1366_v22 = vsub.f32 %v1308_v55, %v1346_v17  ;;  %v1343_v12 = vpop.xlane.xlu0 %1342 }
 0xa90   :  { %v1365_v13 = vsub.f32 %v1303_v41, %v1343_v12 }
 0xa91   :  { %v1375_v15 = vmul.f32 1.442695, %v1366_v22 }
 0xa92   :  { %v1373_v18 = vmul.f32 1.442695, %v1365_v13 }
 0xa93   :  { %2583 = vpow2.f32 %v1375_v15  ;;  %v1349_v19 = vpop.xlane.xlu0 %1348 }
 0xa94   :  { %2585 = vpow2.f32 %v1373_v18  ;;  %v1367_v20 = vsub.f32 %v1313_v63, %v1349_v19 }
 0xa96   :  { %v1377_v45 = vmul.f32 1.442695, %v1367_v20 }
 0xa97   :  { %v1355_v48 = vpop.xlane.xlu1 %1354  ;;  %v1352_v16 = vpop.xlane.xlu0 %1351 }
 0xa98   :  { %2587 = vpow2.f32 %v1377_v45  ;;  %v1368_v21 = vsub.f32 %v1318_v0, %v1352_v16  ;;  %v1369_v52 = vsub.f32 %v3008_v61, %v1355_v48 }
 0xa9a   :  { %v1379_v23 = vmul.f32 1.442695, %v1368_v21  ;;  %v1381_v53 = vmul.f32 1.442695, %v1369_v52 }
 0xa9b   :  { %v1361_v24 = vpop.xlane.xlu1 %1360  ;;  %v1358_v25 = vpop.xlane.xlu0 %1357 }
 0xa9c   :  { %v1370_v26 = vsub.f32 %v1328_v62, %v1358_v25  ;;  %2589 = vpow2.f32 %v1379_v23  ;;  %v1371_v54 = vsub.f32 %v3015_v4, %v1361_v24 }
 0xa9d   :  { %v3029_v27 = vpop.eup %2583 }
 0xa9e   :  { %v2586_v28 = vpop.eup %2585  ;;  %v1383_v29 = vmul.f32 1.442695, %v1370_v26  ;;  %v1392_v30 = vsel %vm457_vm6, %v3029_v27, 0.0  ;;  %v1385_v55 = vmul.f32 1.442695, %v1371_v54 }
 0xa9f   :  { %v2533_v31 = vpop.permute.xlu1 %2532  ;;  %1393 = vadd.xlane.f32.xlu0 %v1392_v30  ;;  %v1364_v32 = vpop.xlane.xlu0 %1363  ;;  %v1389_v33 = vsel %vm457_vm6, %v2586_v28, 0.0 }
 0xaa0   :  { %v2535_v35 = vunpack.i.h.bf16 %v2533_v31  ;;  %v2534_v37 = vunpack.i.l.bf16 %v2533_v31  ;;  %1390 = vadd.xlane.f32.xlu1 %v1389_v33  ;;  %2591 = vpow2.f32 %v1383_v29  ;;  %v1372_v56 = vsub.f32 %v3018_v7, %v1364_v32  ;;  %v1749_v33 = vld [vmem:[#allocation2 + $0x30] sm:$0xff] }
 0xaa1   :  { %2593 = vpow2.f32 %v1381_v53 }
 0xaa2   :  { %v3034_v38 = vpop.eup %2587  ;;  %v2425_v42 = vpack.c.bf16 %v2535_v35, %v2534_v37  ;;  %2595 = vpow2.f32 %v1385_v55  ;;  %v1387_v41 = vmul.f32 1.442695, %v1372_v56  ;;  %v1834_v35 = vld [vmem:[#allocation2 + $0x38] sm:$0xff] }
 0xaa3   :  { %v2538_v43 = vpop.permute.xlu0 %2537  ;;  %v1395_v44 = vsel %vm457_vm6, %v3034_v38, 0.0 }
 0xaa4   :  { %v2540_v34 = vunpack.i.h.bf16 %v2538_v43  ;;  %v2539_v46 = vunpack.i.l.bf16 %v2538_v43  ;;  %2426 = vmatprep.subr.bf16.mxu0 %v2425_v42  ;;  %1396 = vadd.xlane.f32.xlu1 %v1395_v44  ;;  %2597 = vpow2.f32 %v1387_v41  ;;  %v2036_v44 = vld [vmem:[%s3096_s6 + $0x1] ss:$0 sm:$0xff] }
 0xaa5   :  { %2428 = vmatpush3.bf16.msra.mxu0 %v2425_v42 }
 0xaa6   :  { %v2429_v47 = vpack.c.bf16 %v2540_v34, %v2539_v46  ;;  %v2590_v49 = vpop.eup %2589 }
 0xaa7   :  { %v1398_v50 = vsel %vm457_vm6, %v2590_v49, 0.0 }
 0xaa8   :  { %2430 = vmatprep.subr.bf16.mxu0 %v2429_v47  ;;  %1399 = vadd.xlane.f32.xlu0 %v1398_v50 }
 0xaa9   :  { %2432 = vmatpush3.bf16.msra.mxu0 %v2429_v47 }
 0xaaa   :  { %v3039_v40 = vpop.eup %2591 }
 0xaab   :  { %v1404_v51 = vsel %vm457_vm6, %v3039_v40, 0.0  ;;  %v2594_v57 = vpop.eup %2593 }
 0xaac   :  { %1405 = vadd.xlane.f32.xlu0 %v1404_v51  ;;  %v1401_v58 = vsel %vm457_vm6, %v2594_v57, 0.0  ;;  %v2596_v59 = vpop.eup %2595 }
 0xaae   :  { %v2598_v60 = vpop.eup %2597 }
 0xab5   :  { %2542 = vrot.lane.b32.xlu1 %v2969_v36, %s2668_s13  ;;  %v1407_v36 = vsel %vm457_vm6, %v2596_v59, 0.0 }
 0xac2   :  { %2547 = vrot.lane.b32.xlu0 %v2977_v39, %s2668_s13  ;;  %v1410_v39 = vsel %vm457_vm6, %v2598_v60, 0.0  ;;  %s2637_s13 = scalar_lea.vmem %s1937_s10, 256 }
 0xac3   :  { %p2638_p8 = scmp.ne.s32.totalorder %s1937_s10, %s2637_s13  ;;  %p2643_p10 = scmp.lt.s32.totalorder %s2637_s13, %s2637_s13 }
 0xac5   :  { %p2644_p11 = por %p2643_p10, %p2642_p9 }
 0xac7   :  { %p2645_p12 = pnand %p2644_p11, %p2638_p8 }
 0xad9   :  { %1402 = vadd.xlane.f32.xlu1 %v1401_v58 }
 0xadd   :  { %1408 = vadd.xlane.f32.xlu1 %v1407_v36 }
 0xae1   :  { %1411 = vadd.xlane.f32.xlu1 %v1410_v39 }
 0xb2c   :  { %v1394_v1 = vpop.xlane.xlu0 %1393 }
 0xb2d   :  { %v1391_v63 = vpop.xlane.xlu1 %1390 }
 0xb2e   :  { %2599 = vrcp.f32 %v1391_v63 }
 0xb2f   :  { %2601 = vrcp.f32 %v1394_v1 }
 0xb31   :  { %v1397_v0 = vpop.xlane.xlu1 %1396 }
 0xb32   :  { %2603 = vrcp.f32 %v1397_v0 }
 0xb35   :  { %v2543_v2 = vpop.permute.xlu1 %2542  ;;  %v1400_v62 = vpop.xlane.xlu0 %1399 }
 0xb36   :  { %v2545_v3 = vunpack.i.h.bf16 %v2543_v2  ;;  %v2544_v61 = vunpack.i.l.bf16 %v2543_v2  ;;  %2605 = vrcp.f32 %v1400_v62 }
 0xb38   :  { %v2600_v5 = vpop.eup %2599  ;;  %v2433_v6 = vpack.c.bf16 %v2545_v3, %v2544_v61 }
 0xb39   :  { %v1421_v8 = vmul.f32 %v2600_v5, %v2586_v28  ;;  %v1406_v9 = vpop.xlane.xlu0 %1405  ;;  %v2602_v11 = vpop.eup %2601  ;;  %v1583_v28 = vld [vmem:[#allocation2 + $0x20] sm:$0xff] }
 0xb3a   :  { %2434 = vmatprep.subr.bf16.mxu0 %v2433_v6  ;;  %v1422_v22 = vmul.f32 %v2602_v11, %v3029_v27  ;;  %2607 = vrcp.f32 %v1406_v9  ;;  %v1585_v27 = vld [vmem:[#allocation2 + $0x28] sm:$0xff] }
 0xb3b   :  { %2436 = vmatpush3.bf16.msra.mxu0 %v2433_v6  ;;  %2317 = vmatprep.mubr.msk.f32.mxu0 %vm457_vm6, %v1421_v8 }
 0xb3c   :  { %v2604_v17 = vpop.eup %2603 }
 0xb3d   :  { %v2548_v4 = vpop.permute.xlu0 %2547  ;;  %v1423_v13 = vmul.f32 %v2604_v17, %v3034_v38 }
 0xb3e   :  { %v2550_v7 = vunpack.i.h.bf16 %v2548_v4  ;;  %v2549_v10 = vunpack.i.l.bf16 %v2548_v4 }
 0xb40   :  { %v2437_v14 = vpack.c.bf16 %v2550_v7, %v2549_v10  ;;  %v2606_v12 = vpop.eup %2605 }
 0xb41   :  { %v1424_v15 = vmul.f32 %v2606_v12, %v2590_v49 }
 0xb42   :  { %2438 = vmatprep.subr.bf16.mxu0 %v2437_v14 }
 0xb43   :  { %2440 = vmatpush3.bf16.msra.mxu0 %v2437_v14 }
 0xb44   :  { %v2608_v45 = vpop.eup %2607  ;;  %2329 = vmatprep.subr.mxu0 %v1585_v27 }
 0xb45   :  { %v1426_v21 = vmul.f32 %v2608_v45, %v3039_v40 }
 0xb46   :  { %2318 = vmatmul.mubr.msk.f32.vlgmr.msra.gmra.mrb[10].mxu0 %vm457_vm6, %v1422_v22 }
 0xb47   :  { %2320 = vmatprep.mubr.msk.f32.mxu0 %vm457_vm6, %v1423_v13  ;;  %2330 = vmatpush3.msra.mxu0 %v1585_v27 }
 0xb48   :  { %2334 = vmatprep.subr.mxu0 %v1583_v28 }
 0xb4a   :  { %2321 = vmatmul.mubr.msk.f32.gmra.mrb[12].mxu0 %vm457_vm6, %v1424_v15 }
 0xb66   :  { %v1403_v18 = vpop.xlane.xlu1 %1402 }
 0xb67   :  { %2609 = vrcp.f32 %v1403_v18 }
 0xb6a   :  { %v1409_v19 = vpop.xlane.xlu1 %1408 }
 0xb6b   :  { %2611 = vrcp.f32 %v1409_v19 }
 0xb6e   :  { %v1412_v20 = vpop.xlane.xlu1 %1411 }
 0xb6f   :  { %2613 = vrcp.f32 %v1412_v20 }
 0xb71   :  { %v2610_v48 = vpop.eup %2609 }
 0xb72   :  { %v1425_v16 = vmul.f32 %v2610_v48, %v2594_v57 }
 0xb74   :  { %2323 = vmatprep.mubr.msk.f32.mxu0 %vm457_vm6, %v1425_v16 }
 0xb75   :  { %v2612_v23 = vpop.eup %2611  ;;  %2324 = vmatmul.mubr.msk.f32.gmra.mrb[14].mxu0 %vm457_vm6, %v1426_v21 }
 0xb76   :  { %v1427_v24 = vmul.f32 %v2612_v23, %v2596_v59 }
 0xb78   :  { %2326 = vmatprep.mubr.msk.f32.mxu0 %vm457_vm6, %v1427_v24 }
 0xb79   :  { %v2614_v25 = vpop.eup %2613 }
 0xb7a   :  { %v1428_v26 = vmul.f32 %v2614_v25, %v2598_v60 }
 0xb7c   :  { %2327 = vmatmul.mubr.msk.f32.gmra.mrb[16].mxu0 %vm457_vm6, %v1428_v26 }
 0xc19   :  { %v2319_v29 = vpop.f32.mrb[10].mxu0 }
 0xc1a   :  { %v1543_v30 = vpop.f32.mrb[11].mxu0 }
 0xc1d   :  { %v2322_v31 = vpop.f32.mrb[12].mxu0 }
 0xc1e   :  { %v1553_v32 = vpop.f32.mrb[13].mxu0 }
 0xc1f   :  { %2331 = vmatprep.mubr.msk.f32.mxu0 %vm174_vm4, %v1553_v32 }
 0xc20   :  { %2332 = vmatmul.mubr.msk.f32.vlgmr.msra.gmra.mrb[18].mxu0 %vm174_vm4, %v2322_v31 }
 0xc21   :  { %2336 = vmatprep.mubr.msk.f32.mxu0 %vm174_vm4, %v1543_v30  ;;  %2335 = vmatpush3.msra.mxu0 %v1583_v28 }
 0xc22   :  { %2339 = vmatprep.subr.mxu0 %v1749_v33 }
 0xc28   :  { %2337 = vmatmul.mubr.msk.f32.vlgmr.msra.gmra.mrb[18].mxu0 %vm174_vm4, %v2319_v29 }
 0xc29   :  { %2340 = vmatpush3.msra.mxu0 %v1749_v33 }
 0xc2a   :  { %2344 = vmatprep.subr.mxu0 %v1834_v35 }
 0xc48   :  { %v2325_v37 = vpop.f32.mrb[14].mxu0 }
 0xc49   :  { %v1563_v38 = vpop.f32.mrb[15].mxu0 }
 0xc4a   :  { %2341 = vmatprep.mubr.msk.f32.mxu0 %vm174_vm4, %v1563_v38 }
 0xc4b   :  { %2342 = vmatmul.mubr.msk.f32.vlgmr.msra.gmra.mrb[18].mxu0 %vm174_vm4, %v2325_v37 }
 0xc4c   :  { %2345 = vmatpush3.msra.mxu0 %v1834_v35 }
 0xc4f   :  { %v2328_v42 = vpop.f32.mrb[16].mxu0 }
 0xc50   :  { %v1573_v43 = vpop.f32.mrb[17].mxu0 }
 0xc51   :  { %2346 = vmatprep.mubr.msk.f32.mxu0 %vm174_vm4, %v1573_v43 }
 0xc53   :  { %2347 = vmatmul.mubr.msk.f32.vlgmr.msra.gmra.mrb[18].mxu0 %vm174_vm4, %v2328_v42 }
 0xd26   :  { %v2348_v34 = vpop.f32.mrb[18].mxu0 }
 0xd27   :  { %v1927_v46 = vadd.f32 %v2348_v34, %v2036_v44  ;;  %v1907_v47 = vpop.f32.mrb[19].mxu0 }
 0xd28   :  { %v1926_v49 = vadd.f32 %v2036_v44, %v1907_v47 }
 0xd29   :  { %1930 = vst.msk [vmem:[#allocation5 + $0x8] sm:$0xff] %vm1928_vm7, %v1927_v46 }
 0xd2a   :  { %1929 = vst.msk [vmem:[#allocation5] sm:$0xff] %vm1928_vm7, %v1926_v49 }
 0xd2b   :  { %2648 = shalt.err (!%p2645_p12)
}
 0xd2c   :  { %s2649_s6 = scalar_lea.hbm %s3097_s7, 256 }
 0xd2d   :  { %p2650_p13 = scmp.ne.s32.totalorder %s3097_s7, %s2649_s6  ;;  %p2653_p0 = scmp.lt.u32.totalorder %s2649_s6, %s3097_s7 }
 0xd2f   :  { %p2655_p1 = pnand %p2653_p0, %p2650_p13 }
 0xd31   :  { %2658 = shalt.err (!%p2655_p1)
}
 0xd32   :  { %1942 = dma.vmem_to_hbm [thread:$0]  %s1937_s10, 256, %s3097_s7, [#allocation4], %s2664_s11, %s2664_s11, %s2665_s12  }
 0xd33   :  { %2661 = dma.done.wait [#allocation4], 256  }
 0xd34   :  { %2662 = vsyncadd [#allocation4], 4294967040 }
 0xd35   :  { %1946 = vsyncpa [#allocation3], 1 }
 0xd36   :  { %1947 = vsyncpa [#allocation4], 1 }

</bundles_post_ra>
